<compile_context>
chip_gen: v7x
topology: tpu7x:2x2x1
jax: 0.10.0
libtpu: 0.0.40
codegen_flags: <defaults>
</compile_context>

<pallas_src>
import functools

import jax
import jax.numpy as jnp
from jax.experimental import pallas as pl
from jax.experimental.pallas import tpu as pltpu

_LANE = 128          # lane width (VMEM lane padding for footprint estimate)
_BATCH_ALIGN = 16    # batch-tile sublane alignment (covers bf16 packing)
_MIN_TILE_ROWS = 1024  # once tiles are this big, always use >= 2 tiles (v7x: 2 TCs)


def _round_up(n, m):
    return ((n + m - 1) // m) * m


def actor_kernel(x_ref, w1_ref, b1_ref, w2_ref, b2_ref, w3_ref, b3_ref, o_ref):
    """One (tb, state_dim) batch tile of the Actor MLP.

    bf16 MXU matmuls with f32 accumulation; bias/ReLU/softmax in f32.
    Output is the true (tb, action_dim) probability block.
    """
    x = x_ref[...].astype(jnp.bfloat16)              # cast hides under the matmul
    # layer 1: Linear + ReLU
    h1 = jnp.dot(x, w1_ref[...].astype(jnp.bfloat16),
                 preferred_element_type=jnp.float32)
    h1 = jnp.maximum(h1 + b1_ref[...], 0.0)
    # layer 2: Linear + ReLU
    h2 = jnp.dot(h1.astype(jnp.bfloat16), w2_ref[...].astype(jnp.bfloat16),
                 preferred_element_type=jnp.float32)
    h2 = jnp.maximum(h2 + b2_ref[...], 0.0)
    # layer 3: Linear
    logits = jnp.dot(h2.astype(jnp.bfloat16), w3_ref[...].astype(jnp.bfloat16),
                     preferred_element_type=jnp.float32) + b3_ref[...]
    # numerically stable softmax over the action lanes (exact reciprocal:
    # denom is (tb, 1), so exactness is free and row sums are ~1 to f32 eps)
    m = jnp.max(logits, axis=-1, keepdims=True)
    e = jnp.exp(logits - m)
    denom = jnp.sum(e, axis=-1, keepdims=True)
    o_ref[...] = (e * pl.reciprocal(denom, approx=False)).astype(o_ref.dtype)


def _vmem_limit_bytes(tb, S, H, A):
    """Scoped-VMEM limit: actual footprint (lane-padded) + headroom, >= 16 MiB."""
    s_l, h_l, a_l = (_round_up(d, _LANE) for d in (S, H, A))
    weights = (S * h_l + H * h_l + H * a_l + 2 * h_l + a_l) * 4   # f32, VMEM-resident
    io = tb * (s_l + a_l) * 4                                     # x tile + out tile
    temps = tb * (3 * h_l + 3 * a_l) * 4                          # h1/h2/logits/exp (+bf16 copies)
    est = 2 * (weights + io) + temps + (4 << 20)                  # 2x: default double buffering
    return int(max(est, 16 << 20))


@functools.partial(jax.jit, static_argnames=("block_b",))
def actor_forward(x, params, block_b=2048):
    """x: (B, state_dim) f32; params: f32 (in, out) weights + (1, out) biases."""
    w1, b1 = params["w1"], params["b1"]
    w2, b2 = params["w2"], params["b2"]
    w3, b3 = params["w3"], params["b3"]

    B, S = x.shape
    H = w1.shape[1]
    A = w3.shape[1]

    # Batch tiling: tiles big enough to amortize per-grid-step overhead, but
    # at least 2 tiles once the batch is large so both v7x TensorCores get
    # work (the grid axis is marked "parallel"). Small batches run as a
    # single full-batch tile with no padding at all.
    n_tiles = max(1, -(-B // block_b))
    if n_tiles == 1 and B >= 2 * _MIN_TILE_ROWS:
        n_tiles = 2
    if n_tiles == 1:
        tb, B_p = B, B
    else:
        tb = _round_up(-(-B // n_tiles), _BATCH_ALIGN)
        B_p = n_tiles * tb

    # Only the batch tail (if any) is padded; feature dim/dtype pass straight
    # through (no separate padded-x HBM pass in the common case).
    x_p = x if B_p == B else jnp.pad(x, ((0, B_p - B), (0, 0)))

    def resident(shape):  # same block every grid step -> DMA'd once, VMEM-resident
        return pl.BlockSpec(shape, lambda i: (0, 0))

    flops = 2 * B_p * (S * H + H * H + H * A)
    bytes_accessed = (B_p * S * 4
                      + (S * H + H * H + H * A + 2 * H + A) * 4
                      + B_p * A * 4)

    out = pl.pallas_call(
        actor_kernel,
        out_shape=jax.ShapeDtypeStruct((B_p, A), jnp.float32),
        grid=(n_tiles,),
        in_specs=[
            pl.BlockSpec((tb, S), lambda i: (i, 0)),   # x: tiled over batch
            resident((S, H)), resident((1, H)),        # w1, b1
            resident((H, H)), resident((1, H)),        # w2, b2
            resident((H, A)), resident((1, A)),        # w3, b3
        ],
        out_specs=pl.BlockSpec((tb, A), lambda i: (i, 0)),
        compiler_params=pltpu.CompilerParams(
            dimension_semantics=("parallel",),         # shard batch tiles across TCs
            vmem_limit_bytes=_vmem_limit_bytes(tb, S, H, A),
        ),
        cost_estimate=pl.CostEstimate(
            flops=flops,
            transcendentals=B_p * (A + 1),
            bytes_accessed=bytes_accessed,
        ),
    )(x_p, w1, b1, w2, b2, w3, b3)

    return out if B_p == B else out[:B]


def init_params(key, state_dim, hidden_size, action_dim):
    """Deterministic synthetic init (uniform fan-in bound, like torch.nn.Linear)."""
    ks = jax.random.split(key, 6)

    def lin(kw, kb, fan_in, fan_out):
        bound = 1.0 / jnp.sqrt(jnp.float32(fan_in))
        w = jax.random.uniform(kw, (fan_in, fan_out), jnp.float32, -bound, bound)
        b = jax.random.uniform(kb, (1, fan_out), jnp.float32, -bound, bound)
        return w, b

    w1, b1 = lin(ks[0], ks[1], state_dim, hidden_size)
    w2, b2 = lin(ks[2], ks[3], hidden_size, hidden_size)
    w3, b3 = lin(ks[4], ks[5], hidden_size, action_dim)
    return {"w1": w1, "b1": b1, "w2": w2, "b2": b2, "w3": w3, "b3": b3}


def actor_reference(x, p):
    h1 = jnp.maximum(x @ p["w1"] + p["b1"], 0.0)
    h2 = jnp.maximum(h1 @ p["w2"] + p["b2"], 0.0)
    logits = h2 @ p["w3"] + p["b3"]
    return jax.nn.softmax(logits, axis=-1)


if __name__ == "__main__":
    key = jax.random.PRNGKey(0)
    kx, kp, kx2 = jax.random.split(key, 3)

    batch = 4
    state_dim = 16
    hidden_size = 32   # small hidden size for the synthetic test (module default is 256)
    action_dim = 8

    x = jax.random.normal(kx, (batch, state_dim), jnp.float32)
    params = init_params(kp, state_dim, hidden_size, action_dim)

    out = jax.block_until_ready(actor_forward(x, params))
    ref = actor_reference(x, params)

    assert out.shape == (batch, action_dim)
    # f32 softmax with exact reciprocal -> rows sum to 1 to ~f32 eps.
    assert jnp.allclose(jnp.sum(out, axis=-1), 1.0, atol=1e-3)
    # bf16 MXU inputs with f32 accumulation loosen the elementwise tolerance.
    assert jnp.allclose(out, ref, atol=2e-2, rtol=2e-2)

    # Exercise the multi-tile path (grid > 1, batch-tail padding) as well.
    batch2 = 40
    x2 = jax.random.normal(kx2, (batch2, state_dim), jnp.float32)
    out2 = jax.block_until_ready(actor_forward(x2, params, block_b=16))
    ref2 = actor_reference(x2, params)
    assert out2.shape == (batch2, action_dim)
    assert jnp.allclose(jnp.sum(out2, axis=-1), 1.0, atol=1e-3)
    assert jnp.allclose(out2, ref2, atol=2e-2, rtol=2e-2)

    print("KERNEL_OK")
</pallas_src>

<mosaic_0001>
module attributes {stable_mosaic.version = 11 : i64} {
  func.func @actor_kernel(%arg0: i32, %arg1: memref<4x16xf32, #tpu.memory_space<vmem>>, %arg2: memref<16x32xf32, #tpu.memory_space<vmem>>, %arg3: memref<1x32xf32, #tpu.memory_space<vmem>>, %arg4: memref<32x32xf32, #tpu.memory_space<vmem>>, %arg5: memref<1x32xf32, #tpu.memory_space<vmem>>, %arg6: memref<32x8xf32, #tpu.memory_space<vmem>>, %arg7: memref<1x8xf32, #tpu.memory_space<vmem>>, %arg8: memref<4x8xf32, #tpu.memory_space<vmem>>) attributes {dimension_semantics = [#tpu.dimension_semantics<parallel>], iteration_bounds = array<i64: 1>, scalar_prefetch = 0 : i64, scratch_operands = 0 : i64, tpu.core_type = #tpu.core_type<tc>, window_params = [{transform_indices = @transform_0, window_bounds = array<i64: 4, 16>}, {pipeline_mode = #tpu.pipeline_mode<synchronous>, transform_indices = @transform_1, window_bounds = array<i64: 16, 32>}, {pipeline_mode = #tpu.pipeline_mode<synchronous>, transform_indices = @transform_2, window_bounds = array<i64: 1, 32>}, {pipeline_mode = #tpu.pipeline_mode<synchronous>, transform_indices = @transform_3, window_bounds = array<i64: 32, 32>}, {pipeline_mode = #tpu.pipeline_mode<synchronous>, transform_indices = @transform_4, window_bounds = array<i64: 1, 32>}, {pipeline_mode = #tpu.pipeline_mode<synchronous>, transform_indices = @transform_5, window_bounds = array<i64: 32, 8>}, {pipeline_mode = #tpu.pipeline_mode<synchronous>, transform_indices = @transform_6, window_bounds = array<i64: 1, 8>}, {transform_indices = @transform_7, window_bounds = array<i64: 4, 8>}]} {
    %c0 = arith.constant 0 : index
    %c0_0 = arith.constant 0 : index
    %0 = vector.load %arg1[%c0, %c0_0] : memref<4x16xf32, #tpu.memory_space<vmem>>, vector<4x16xf32>
    %1 = arith.truncf %0 : vector<4x16xf32> to vector<4x16xbf16>
    %c0_1 = arith.constant 0 : index
    %c0_2 = arith.constant 0 : index
    %2 = vector.load %arg2[%c0_1, %c0_2] : memref<16x32xf32, #tpu.memory_space<vmem>>, vector<16x32xf32>
    %3 = arith.truncf %2 : vector<16x32xf32> to vector<16x32xbf16>
    %cst = arith.constant dense<0.000000e+00> : vector<4x32xf32>
    %4 = tpu.matmul %1, %3, %cst {dimension_numbers = #tpu.dot_dimension_numbers<[1], [0], [0], [1], [0, 0, 1, 1], [], []>} : vector<4x16xbf16>, vector<16x32xbf16>, vector<4x32xf32> -> vector<4x32xf32>
    %c0_3 = arith.constant 0 : index
    %c0_4 = arith.constant 0 : index
    %5 = vector.load %arg3[%c0_3, %c0_4] : memref<1x32xf32, #tpu.memory_space<vmem>>, vector<1x32xf32>
    %6 = vector.broadcast %5 : vector<1x32xf32> to vector<4x32xf32>
    %7 = arith.addf %4, %6 : vector<4x32xf32>
    %cst_5 = arith.constant 0.000000e+00 : f32
    %8 = vector.broadcast %cst_5 : f32 to vector<4x32xf32>
    %9 = arith.maximumf %7, %8 : vector<4x32xf32>
    %10 = arith.truncf %9 : vector<4x32xf32> to vector<4x32xbf16>
    %c0_6 = arith.constant 0 : index
    %c0_7 = arith.constant 0 : index
    %11 = vector.load %arg4[%c0_6, %c0_7] : memref<32x32xf32, #tpu.memory_space<vmem>>, vector<32x32xf32>
    %12 = arith.truncf %11 : vector<32x32xf32> to vector<32x32xbf16>
    %cst_8 = arith.constant dense<0.000000e+00> : vector<4x32xf32>
    %13 = tpu.matmul %10, %12, %cst_8 {dimension_numbers = #tpu.dot_dimension_numbers<[1], [0], [0], [1], [0, 0, 1, 1], [], []>} : vector<4x32xbf16>, vector<32x32xbf16>, vector<4x32xf32> -> vector<4x32xf32>
    %c0_9 = arith.constant 0 : index
    %c0_10 = arith.constant 0 : index
    %14 = vector.load %arg5[%c0_9, %c0_10] : memref<1x32xf32, #tpu.memory_space<vmem>>, vector<1x32xf32>
    %15 = vector.broadcast %14 : vector<1x32xf32> to vector<4x32xf32>
    %16 = arith.addf %13, %15 : vector<4x32xf32>
    %cst_11 = arith.constant 0.000000e+00 : f32
    %17 = vector.broadcast %cst_11 : f32 to vector<4x32xf32>
    %18 = arith.maximumf %16, %17 : vector<4x32xf32>
    %19 = arith.truncf %18 : vector<4x32xf32> to vector<4x32xbf16>
    %c0_12 = arith.constant 0 : index
    %c0_13 = arith.constant 0 : index
    %20 = vector.load %arg6[%c0_12, %c0_13] : memref<32x8xf32, #tpu.memory_space<vmem>>, vector<32x8xf32>
    %21 = arith.truncf %20 : vector<32x8xf32> to vector<32x8xbf16>
    %cst_14 = arith.constant dense<0.000000e+00> : vector<4x8xf32>
    %22 = tpu.matmul %19, %21, %cst_14 {dimension_numbers = #tpu.dot_dimension_numbers<[1], [0], [0], [1], [0, 0, 1, 1], [], []>} : vector<4x32xbf16>, vector<32x8xbf16>, vector<4x8xf32> -> vector<4x8xf32>
    %c0_15 = arith.constant 0 : index
    %c0_16 = arith.constant 0 : index
    %23 = vector.load %arg7[%c0_15, %c0_16] : memref<1x8xf32, #tpu.memory_space<vmem>>, vector<1x8xf32>
    %24 = vector.broadcast %23 : vector<1x8xf32> to vector<4x8xf32>
    %25 = arith.addf %22, %24 : vector<4x8xf32>
    %cst_17 = arith.constant dense<0xFF800000> : vector<4xf32>
    %26 = vector.multi_reduction <maximumf>, %25, %cst_17 [1] : vector<4x8xf32> to vector<4xf32>
    %27 = vector.shape_cast %26 : vector<4xf32> to vector<4x1xf32>
    %28 = vector.broadcast %27 : vector<4x1xf32> to vector<4x8xf32>
    %29 = arith.subf %25, %28 : vector<4x8xf32>
    %30 = math.exp %29 : vector<4x8xf32>
    %cst_18 = arith.constant dense<0.000000e+00> : vector<4xf32>
    %31 = vector.multi_reduction <add>, %30, %cst_18 [1] : vector<4x8xf32> to vector<4xf32>
    %32 = vector.shape_cast %31 : vector<4xf32> to vector<4x1xf32>
    %33 = tpu.reciprocal %32 : vector<4x1xf32> -> vector<4x1xf32>
    %34 = vector.broadcast %33 : vector<4x1xf32> to vector<4x8xf32>
    %35 = arith.mulf %30, %34 : vector<4x8xf32>
    %c0_19 = arith.constant 0 : index
    %c0_20 = arith.constant 0 : index
    %36 = vector.load %arg8[%c0_19, %c0_20] : memref<4x8xf32, #tpu.memory_space<vmem>>, vector<4x8xf32>
    tpu.vector_store %arg8[%c0_19, %c0_20], %35 {strides = array<i32>} : memref<4x8xf32, #tpu.memory_space<vmem>>, vector<4x8xf32>,
    return
  }
  func.func @transform_0(%arg0: i32) -> (i32, i32) {
    %c0_i32 = arith.constant 0 : i32
    %c0_i32_0 = arith.constant 0 : i32
    return %arg0, %c0_i32 : i32, i32
  }
  func.func @transform_1(%arg0: i32) -> (i32, i32) {
    %c0_i32 = arith.constant 0 : i32
    %c0_i32_0 = arith.constant 0 : i32
    %c0_i32_1 = arith.constant 0 : i32
    return %c0_i32, %c0_i32_0 : i32, i32
  }
  func.func @transform_2(%arg0: i32) -> (i32, i32) {
    %c0_i32 = arith.constant 0 : i32
    %c0_i32_0 = arith.constant 0 : i32
    %c0_i32_1 = arith.constant 0 : i32
    return %c0_i32, %c0_i32_0 : i32, i32
  }
  func.func @transform_3(%arg0: i32) -> (i32, i32) {
    %c0_i32 = arith.constant 0 : i32
    %c0_i32_0 = arith.constant 0 : i32
    %c0_i32_1 = arith.constant 0 : i32
    return %c0_i32, %c0_i32_0 : i32, i32
  }
  func.func @transform_4(%arg0: i32) -> (i32, i32) {
    %c0_i32 = arith.constant 0 : i32
    %c0_i32_0 = arith.constant 0 : i32
    %c0_i32_1 = arith.constant 0 : i32
    return %c0_i32, %c0_i32_0 : i32, i32
  }
  func.func @transform_5(%arg0: i32) -> (i32, i32) {
    %c0_i32 = arith.constant 0 : i32
    %c0_i32_0 = arith.constant 0 : i32
    %c0_i32_1 = arith.constant 0 : i32
    return %c0_i32, %c0_i32_0 : i32, i32
  }
  func.func @transform_6(%arg0: i32) -> (i32, i32) {
    %c0_i32 = arith.constant 0 : i32
    %c0_i32_0 = arith.constant 0 : i32
    %c0_i32_1 = arith.constant 0 : i32
    return %c0_i32, %c0_i32_0 : i32, i32
  }
  func.func @transform_7(%arg0: i32) -> (i32, i32) {
    %c0_i32 = arith.constant 0 : i32
    %c0_i32_0 = arith.constant 0 : i32
    return %arg0, %c0_i32 : i32, i32
  }
}

</mosaic_0001>

<bundles_post_ra>
// kernel: actor_forward.1
= control target key start
LH: loop header
LB: loop body
LE: loop exit
PB: predicated region body
PF: predicated region fallthrough
CT: control target
= control target key end

     0   :  { %12 = vsyncpa [#allocation3], 0  ;;  %s443_s0 = inlined_call_operand.vmem [shape: f32[4,16], index: 0, kind: input, shape index: {}]   ;;  %s444_s1 = inlined_call_operand.vmem [shape: f32[16,32], index: 1, kind: input, shape index: {}]   ;;  %s445_s2 = inlined_call_operand.vmem [shape: f32[1,32], index: 2, kind: input, shape index: {}]   ;;  %s446_s3 = inlined_call_operand.vmem [shape: f32[32,32], index: 3, kind: input, shape index: {}]   ;;  %s447_s4 = inlined_call_operand.vmem [shape: f32[1,32], index: 4, kind: input, shape index: {}]   ;;  %s448_s5 = inlined_call_operand.vmem [shape: f32[32,8], index: 5, kind: input, shape index: {}]   ;;  %s449_s6 = inlined_call_operand.hbm [shape: f32[1,8], index: 6, kind: input, shape index: {}]   ;;  %s450_s7 = inlined_call_operand.hbm [shape: f32[4,8], index: 7, kind: output, shape index: {}]  }
   0x1   :  { %13 = vsyncpa [#allocation4], 0  ;;  %s333_s24 = smov [#allocation2]   ;;  %s285_s28 = scalar_lea.hbm %s449_s6, 16 }
   0x2   :  { %s32_s25 = sshll.u32 %s333_s24, 4  ;;  %p286_p0 = scmp.ne.s32.totalorder %s449_s6, %s285_s28  ;;  %s33_s25 = int_to_ptr.vmem [resolvable:$true] %s32_s25 }
   0x3   :  { %p289_p1 = scmp.lt.u32.totalorder %s285_s28, %s449_s6 }
   0x5   :  { %p291_p2 = pnand %p289_p1, %p286_p0 }
   0x7   :  { %294 = shalt.err (!%p291_p2)
}
   0x8   :  { %s295_s10 = scalar_lea.vmem %s33_s25, 16  ;;  %s299_s11 = scalar_lea.vmem %s33_s25, 32 }
   0x9   :  { %p296_p3 = scmp.ne.s32.totalorder %s33_s25, %s295_s10  ;;  %p300_p4 = scmp.lt.s32.totalorder %s33_s25, %s33_s25 }
   0xa   :  { %p301_p5 = scmp.lt.s32.totalorder %s299_s11, %s295_s10 }
   0xc   :  { %p302_p6 = por %p301_p5, %p300_p4 }
   0xe   :  { %p303_p7 = pnand %p302_p6, %p296_p3 }
  0x10   :  { %306 = shalt.err (!%p303_p7)
}
  0x11   :  { %35 = dma.hbm_to_vmem [thread:$0]  %s449_s6, 16, %s33_s25, [#allocation3]  }
  0x12   :  { %329 = dma.done.wait [#allocation3], 16  }
  0x13   :  { %330 = vsyncadd [#allocation3], 4294967280  ;;  %v334_v0 = vmov 0.0   ;;  %vm335_vm0 = vmmov 0   ;;  %v42_v1 = vld [vmem:[%s444_s1] sm:$0xff]  ;;  %v43_v2 = vld [vmem:[%s444_s1 + $0x8] sm:$0xff] }
  0x14   :  { %255 = vmatprep.subr.bf16.mxu0 %v334_v0  ;;  %257 = vmatprep.mubr.msk.bf16.mxu0 %vm335_vm0, %v334_v0  ;;  %v40_v3 = vld [vmem:[%s443_s0] sm:$0xf]  ;;  %v44_v4 = vpack.c.bf16 %v43_v2, %v42_v1  ;;  %vm52_vm1 = vcmask 130048   ;;  %v99_v7 = vld [vmem:[%s446_s3 + $0x8] sm:$0xff]  ;;  %v100_v9 = vld [vmem:[%s446_s3 + $0x10] sm:$0xff]  ;;  %vm111_vm2 = vcmask 261120  }
  0x15   :  { %261 = vmatprep.subr.bf16.mxu1 %v334_v0  ;;  %265 = vmatprep.mubr.msk.bf16.mxu1 %vm335_vm0, %v334_v0  ;;  %v41_v5 = vpack.c.bf16 %v40_v3, %v40_v3  ;;  %v98_v6 = vld [vmem:[%s446_s3] sm:$0xff]  ;;  %v101_v10 = vld [vmem:[%s446_s3 + $0x18] sm:$0xff]  ;;  %v158_v13 = vld [vmem:[%s448_s5 + $0x8] sm:$0xff]  ;;  %vm213_vm3 = vcmask 60416  }
  0x16   :  { %256 = vmatpush3.bf16.msra.mxu0 %v44_v4  ;;  %v102_v8 = vpack.c.bf16 %v99_v7, %v98_v6  ;;  %v103_v11 = vpack.c.bf16 %v101_v10, %v100_v9  ;;  %v157_v12 = vld [vmem:[%s448_s5] sm:$0xff]  ;;  %v159_v23 = vld [vmem:[%s448_s5 + $0x10] sm:$0xff]  ;;  %v160_v24 = vld [vmem:[%s448_s5 + $0x18] sm:$0xff] }
  0x17   :  { %269 = vmatprep.subr.bf16.mxu0 %v334_v0  ;;  %v161_v14 = vpack.c.bf16 %v158_v13, %v157_v12  ;;  %v241_v15 = vld [vmem:[%s445_s2] ss:$0 sm:$0xff]  ;;  %v162_v25 = vpack.c.bf16 %v160_v24, %v159_v23 }
  0x18   :  { %262 = vmatpush3.bf16.msra.mxu1 %v102_v8  ;;  %v243_v26 = vld [vmem:[%s447_s4] ss:$0 sm:$0xff]  ;;  %s336_s4 = smov [#allocation5]  }
  0x19   :  { %258 = vmatmul.mubr.msk.bf16.vlgmr.msra.gmra.mrb[0].mxu0 %vm52_vm1, %v41_v5  ;;  %263 = vmatprep.subr.bf16.mxu1 %v334_v0  ;;  %v245_v34 = vld [vmem:[#allocation2] ss:$0 sm:$0xff]  ;;  %s232_s5 = sshll.u32 %s336_s4, 4  ;;  %s233_s5 = int_to_ptr.vmem [resolvable:$true] %s232_s5 }
  0x1a   :  { %273 = vmatprep.mubr.msk.bf16.mxu0 %vm335_vm0, %v334_v0  ;;  %270 = vmatpush3.bf16.msra.mxu0 %v161_v14  ;;  %s307_s12 = scalar_lea.vmem %s233_s5, 64  ;;  %p312_p9 = scmp.lt.s32.totalorder %s233_s5, %s233_s5 }
  0x1b   :  { %271 = vmatprep.subr.bf16.mxu0 %v334_v0  ;;  %p308_p8 = scmp.ne.s32.totalorder %s233_s5, %s307_s12  ;;  %p313_p10 = scmp.lt.s32.totalorder %s307_s12, %s307_s12 }
  0x1c   :  { %264 = vmatpush3.bf16.msra.mxu1 %v103_v11 }
  0x1d   :  { %p314_p11 = por %p313_p10, %p312_p9 }
  0x1e   :  { %272 = vmatpush3.bf16.msra.mxu0 %v162_v25 }
  0x1f   :  { %p315_p12 = pnand %p314_p11, %p308_p8 }
  0xec   :  { %v90_v16 = vpop.f32.mrb[0].mxu0 }
  0xed   :  { %v91_v17 = vadd.f32 %v241_v15, %v90_v16  ;;  %v259_v18 = vpop.f32.mrb[1].mxu0 }
  0xee   :  { %v93_v19 = vpop.f32.mrb[2].mxu0 }
  0xef   :  { %v96_v20 = vmax.f32 %v91_v17, 0.0  ;;  %v260_v21 = vpop.f32.mrb[3].mxu0 }
  0xf1   :  { %v97_v22 = vpack.c.bf16 %v96_v20, %v96_v20 }
  0xf3   :  { %266 = vmatmul.mubr.msk.bf16.vlgmr.msra.gmra.mrb[0].mxu1 %vm111_vm2, %v97_v22 }
 0x1c6   :  { %v149_v27 = vpop.f32.mrb[0].mxu1 }
 0x1c7   :  { %v150_v28 = vadd.f32 %v243_v26, %v149_v27  ;;  %v267_v29 = vpop.f32.mrb[1].mxu1 }
 0x1c8   :  { %v152_v30 = vpop.f32.mrb[2].mxu1 }
 0x1c9   :  { %v155_v31 = vmax.f32 %v150_v28, 0.0  ;;  %v268_v32 = vpop.f32.mrb[3].mxu1 }
 0x1cb   :  { %v156_v33 = vpack.c.bf16 %v155_v31, %v155_v31 }
 0x1cd   :  { %274 = vmatmul.mubr.msk.bf16.vlgmr.msra.gmra.mrb[4].mxu0 %vm111_vm2, %v156_v33 }
 0x2a0   :  { %v207_v35 = vpop.f32.mrb[4].mxu0 }
 0x2a1   :  { %v208_v36 = vadd.f32 %v245_v34, %v207_v35  ;;  %v275_v37 = vpop.f32.mrb[5].mxu0 }
 0x2a2   :  { %v210_v38 = vpop.f32.mrb[6].mxu0 }
 0x2a3   :  { %v276_v39 = vpop.f32.mrb[7].mxu0  ;;  %v214_v40 = vsel %vm213_vm3, %v208_v36, -inf }
 0x2a4   :  { %215 = vmax.xlane.f32.xlu0 %v214_v40 }
 0x331   :  { %v216_v41 = vpop.xlane.xlu0 %215 }
 0x332   :  { %v217_v42 = vsub.f32 %v208_v36, %v216_v41 }
 0x334   :  { %v218_v43 = vmul.f32 1.442695, %v217_v42 }
 0x336   :  { %281 = vpow2.f32 %v218_v43 }
 0x340   :  { %v282_v44 = vpop.eup %281 }
 0x341   :  { %v220_v45 = vsel %vm213_vm3, %v282_v44, 0.0 }
 0x342   :  { %221 = vadd.xlane.f32.xlu0 %v220_v45 }
 0x3cf   :  { %v222_v46 = vpop.xlane.xlu0 %221 }
 0x3d0   :  { %283 = vrcp.f32 %v222_v46 }
 0x3da   :  { %v284_v47 = vpop.eup %283 }
 0x3db   :  { %v224_v48 = vmul.f32 %v284_v47, %v282_v44 }
 0x3dd   :  { %225 = vst.msk [vmem:[#allocation5] sm:$0xf] %vm213_vm3, %v224_v48 }
 0x3de   :  { %318 = shalt.err (!%p315_p12)
}
 0x3df   :  { %s319_s15 = scalar_lea.hbm %s450_s7, 64 }
 0x3e0   :  { %p320_p13 = scmp.ne.s32.totalorder %s450_s7, %s319_s15  ;;  %p323_p0 = scmp.lt.u32.totalorder %s319_s15, %s450_s7 }
 0x3e2   :  { %p325_p1 = pnand %p323_p0, %p320_p13 }
 0x3e4   :  { %328 = shalt.err (!%p325_p1)
}
 0x3e5   :  { %235 = dma.vmem_to_hbm [thread:$0]  %s233_s5, 64, %s450_s7, [#allocation4]  }
 0x3e6   :  { %331 = dma.done.wait [#allocation4], 64  }
 0x3e7   :  { %332 = vsyncadd [#allocation4], 4294967232 }
 0x3e8   :  { %239 = vsyncpa [#allocation3], 1 }
 0x3e9   :  { %240 = vsyncpa [#allocation4], 1 }

</bundles_post_ra>
